<compile_context>
chip_gen: v7x
topology: tpu7x:2x2x1
jax: 0.10.0
libtpu: 0.0.40
codegen_flags: <defaults>
</compile_context>

<pallas_src>
import jax
import jax.numpy as jnp
from jax.experimental import pallas as pl
from jax.experimental.pallas import tpu as pltpu


def _gm_eps_kernel(scale_ref, x_ref, mu_ref, prec_ref, logit_ref, out_ref):
    # scale_ref: SMEM (1,)        2 * sqrt(1 - acp_t)
    # x_ref:     VMEM (D, tb)     batch tile, batch on LANES
    # mu_ref:    VMEM (K, D)      sqrt(acp_t) * means
    # prec_ref:  VMEM (K, D, D)   0.5 * S_k^{-1}   (half folded in glue)
    # logit_ref: VMEM (K, 1)      log pi_k - 0.5 * logdet(S_k)
    # out_ref:   VMEM (D, tb)
    x = x_ref[...]                                     # (D, tb)
    mu = mu_ref[...]                                   # (K, D)
    prec_h = prec_ref[...]                             # (K, D, D)

    delta = x[None, :, :] - mu[:, :, None]             # (K, D, tb)

    # y_h[k, d, b] = sum_e prec_h[k, d, e] * delta[k, e, b]
    # D is small -> VPU broadcast multiply + cross-sublane (XLU) reduce; avoids
    # K tiny (8x8)@(8,tb) MXU matmuls with full drain latency each.
    # TODO(synk): for large D switch to a single block-diagonal (K*D,K*D) matmul.
    y_h = jnp.sum(prec_h[:, :, :, None] * delta[:, None, :, :], axis=2)  # (K, D, tb)

    # quad_h = 0.5 * (x - mu_k)^T S_k^{-1} (x - mu_k)
    quad_h = jnp.sum(delta * y_h, axis=1)              # (K, tb)

    logits = logit_ref[...] - quad_h                   # (K, tb); (K,1) lane-broadcast
    m = jnp.max(logits, axis=0, keepdims=True)         # (1, tb)
    w = jnp.exp(logits - m)                            # (K, tb)
    # EUP approximate reciprocal: keeps the divide off the VALU slots.
    r = w * pl.reciprocal(jnp.sum(w, axis=0, keepdims=True), approx=True)

    out = jnp.sum(r[:, None, :] * y_h, axis=0)         # (D, tb)
    out_ref[...] = scale_ref[0] * out                  # scale = 2*sqrt(1-acp)


def epsilon_net_gm(x, t, means, covs, weights, alphas_cumprod, *, tb=1024):
    """Pallas implementation of EpsilonNetGM.forward(x, t). x: (B, D)."""
    B, D = x.shape
    K = weights.shape[0]

    # --- glue: per-timestep mixture parameters (tiny, independent of x) ---
    # TODO(synk): inv/slogdet of the per-timestep covariances stays in plain JAX
    # (no Pallas linear-algebra primitive); a Cholesky-based solve would be more
    # robust when acp -> 1, but this matches the reference module.
    acp = alphas_cumprod[t].astype(jnp.float32)
    mu = jnp.sqrt(acp) * means.astype(jnp.float32)                       # (K, D)
    eye = jnp.eye(D, dtype=jnp.float32)
    sigma = (1.0 - acp) * eye[None, :, :] + acp * covs.astype(jnp.float32)
    prec_half = (0.5 * jnp.linalg.inv(sigma)).astype(jnp.float32)        # (K, D, D)
    _, logdet = jnp.linalg.slogdet(sigma)                                # (K,)
    log_pi = jnp.log(weights / jnp.sum(weights))                         # (K,)
    logits0 = (log_pi - 0.5 * logdet).reshape(K, 1).astype(jnp.float32)  # (K, 1)
    scale2 = (2.0 * jnp.sqrt(1.0 - acp)).reshape((1,)).astype(jnp.float32)

    # --- lane-dense layout: batch on lanes, padded to a multiple of 128 ---
    LANE = 128
    tile = min(tb, pl.cdiv(B, LANE) * LANE)     # multiple of 128 (or full batch pad)
    Bp = pl.cdiv(B, tile) * tile                # padded batch, divisible by tile
    xT = jnp.pad(x.astype(jnp.float32).T, ((0, 0), (0, Bp - B)))         # (D, Bp)

    grid = (Bp // tile,)
    outT = pl.pallas_call(
        _gm_eps_kernel,
        out_shape=jax.ShapeDtypeStruct((D, Bp), jnp.float32),
        grid=grid,
        in_specs=[
            pl.BlockSpec(memory_space=pltpu.MemorySpace.SMEM),           # scale2
            pl.BlockSpec((D, tile), lambda i: (0, i)),                   # x tile
            pl.BlockSpec((K, D), lambda i: (0, 0)),                      # mu
            pl.BlockSpec((K, D, D), lambda i: (0, 0, 0)),                # 0.5*prec
            pl.BlockSpec((K, 1), lambda i: (0, 0)),                      # logits0
        ],
        out_specs=pl.BlockSpec((D, tile), lambda i: (0, i)),
        compiler_params=pltpu.CompilerParams(
            dimension_semantics=("parallel",)),                          # shards batch across TCs (v7x)
    )(scale2, xT, mu, prec_half, logits0)
    return outT[:, :B].T                                                 # (B, D)


def _reference_epsilon(x, t, means, covs, weights, alphas_cumprod):
    """Pure-JAX reference: autodiff of the mixture log-prob, mirroring torch.func.grad."""
    acp = alphas_cumprod[t]
    D = means.shape[-1]
    mu = jnp.sqrt(acp) * means
    sigma = (1.0 - acp) * jnp.eye(D) + acp * covs
    log_pi = jnp.log(weights / jnp.sum(weights))

    def logprob_sum(xx):
        def comp_logpdf(m, S):
            d = xx - m                                       # (B, D)
            sol = jnp.linalg.solve(S, d.T).T                 # (B, D)
            quad = jnp.sum(d * sol, axis=-1)                 # (B,)
            _, ld = jnp.linalg.slogdet(S)
            return -0.5 * (quad + ld + D * jnp.log(2.0 * jnp.pi))
        lps = jax.vmap(comp_logpdf)(mu, sigma)               # (K, B)
        return jnp.sum(jax.scipy.special.logsumexp(lps + log_pi[:, None], axis=0))

    g = jax.grad(logprob_sum)(x)
    return -jnp.sqrt(1.0 - acp) * g


if __name__ == "__main__":
    key = jax.random.PRNGKey(0)
    k_means, k_cov, k_w, k_x = jax.random.split(key, 4)

    K, D, B, T = 4, 8, 16, 10      # mixtures, dim, batch, diffusion steps
    t = 3                          # timestep index

    means = 2.0 * jax.random.normal(k_means, (K, D), dtype=jnp.float32)
    A = 0.3 * jax.random.normal(k_cov, (K, D, D), dtype=jnp.float32)
    covs = jnp.einsum('kij,klj->kil', A, A) + jnp.eye(D, dtype=jnp.float32)[None]
    weights = jax.random.uniform(k_w, (K,), dtype=jnp.float32) + 0.5
    betas = jnp.linspace(1e-3, 0.2, T, dtype=jnp.float32)
    alphas_cumprod = jnp.cumprod(1.0 - betas)

    x = jax.random.normal(k_x, (B, D), dtype=jnp.float32)

    out = epsilon_net_gm(x, t, means, covs, weights, alphas_cumprod)
    out = jax.block_until_ready(out)

    ref = _reference_epsilon(x, t, means, covs, weights, alphas_cumprod)
    assert out.shape == (B, D)
    assert jnp.allclose(out, ref, atol=5e-3, rtol=5e-3), (
        f"max abs err {jnp.max(jnp.abs(out - ref))}")

    print("KERNEL_OK")
</pallas_src>

<mosaic_0001>
module attributes {stable_mosaic.version = 11 : i64} {
  func.func @_gm_eps_kernel(%arg0: i32, %arg1: memref<1xf32, #tpu.memory_space<smem>>, %arg2: memref<8x128xf32, #tpu.memory_space<vmem>>, %arg3: memref<4x8xf32, #tpu.memory_space<vmem>>, %arg4: memref<4x8x8xf32, #tpu.memory_space<vmem>>, %arg5: memref<4x1xf32, #tpu.memory_space<vmem>>, %arg6: memref<8x128xf32, #tpu.memory_space<vmem>>) attributes {dimension_semantics = [#tpu.dimension_semantics<parallel>], iteration_bounds = array<i64: 1>, scalar_prefetch = 0 : i64, scratch_operands = 0 : i64, tpu.core_type = #tpu.core_type<tc>, window_params = [{transform_indices = @transform_0, window_bounds = array<i64: 1>}, {transform_indices = @transform_1, window_bounds = array<i64: 8, 128>}, {pipeline_mode = #tpu.pipeline_mode<synchronous>, transform_indices = @transform_2, window_bounds = array<i64: 4, 8>}, {pipeline_mode = #tpu.pipeline_mode<synchronous>, transform_indices = @transform_3, window_bounds = array<i64: 4, 8, 8>}, {pipeline_mode = #tpu.pipeline_mode<synchronous>, transform_indices = @transform_4, window_bounds = array<i64: 4, 1>}, {transform_indices = @transform_5, window_bounds = array<i64: 8, 128>}]} {
    %c0 = arith.constant 0 : index
    %c0_0 = arith.constant 0 : index
    %0 = vector.load %arg2[%c0, %c0_0] : memref<8x128xf32, #tpu.memory_space<vmem>>, vector<8x128xf32>
    %c0_1 = arith.constant 0 : index
    %c0_2 = arith.constant 0 : index
    %1 = vector.load %arg3[%c0_1, %c0_2] : memref<4x8xf32, #tpu.memory_space<vmem>>, vector<4x8xf32>
    %c0_3 = arith.constant 0 : index
    %c0_4 = arith.constant 0 : index
    %c0_5 = arith.constant 0 : index
    %2 = vector.load %arg4[%c0_3, %c0_4, %c0_5] : memref<4x8x8xf32, #tpu.memory_space<vmem>>, vector<4x8x8xf32>
    %3 = vector.shape_cast %0 : vector<8x128xf32> to vector<1x8x128xf32>
    %4 = vector.shape_cast %1 : vector<4x8xf32> to vector<4x8x1xf32>
    %5 = vector.broadcast %3 : vector<1x8x128xf32> to vector<4x8x128xf32>
    %6 = vector.broadcast %4 : vector<4x8x1xf32> to vector<4x8x128xf32>
    %7 = arith.subf %5, %6 : vector<4x8x128xf32>
    %8 = vector.shape_cast %2 : vector<4x8x8xf32> to vector<4x8x8x1xf32>
    %9 = vector.shape_cast %7 : vector<4x8x128xf32> to vector<4x1x8x128xf32>
    %10 = vector.broadcast %8 : vector<4x8x8x1xf32> to vector<4x8x8x128xf32>
    %11 = vector.broadcast %9 : vector<4x1x8x128xf32> to vector<4x8x8x128xf32>
    %12 = arith.mulf %10, %11 : vector<4x8x8x128xf32>
    %cst = arith.constant dense<0.000000e+00> : vector<4x8x128xf32>
    %13 = vector.multi_reduction <add>, %12, %cst [2] : vector<4x8x8x128xf32> to vector<4x8x128xf32>
    %14 = arith.mulf %7, %13 : vector<4x8x128xf32>
    %cst_6 = arith.constant dense<0.000000e+00> : vector<4x128xf32>
    %15 = vector.multi_reduction <add>, %14, %cst_6 [1] : vector<4x8x128xf32> to vector<4x128xf32>
    %c0_7 = arith.constant 0 : index
    %c0_8 = arith.constant 0 : index
    %16 = vector.load %arg5[%c0_7, %c0_8] : memref<4x1xf32, #tpu.memory_space<vmem>>, vector<4x1xf32>
    %17 = vector.broadcast %16 : vector<4x1xf32> to vector<4x128xf32>
    %18 = arith.subf %17, %15 : vector<4x128xf32>
    %cst_9 = arith.constant dense<0xFF800000> : vector<128xf32>
    %19 = vector.multi_reduction <maximumf>, %18, %cst_9 [0] : vector<4x128xf32> to vector<128xf32>
    %20 = vector.shape_cast %19 : vector<128xf32> to vector<1x128xf32>
    %21 = vector.broadcast %20 : vector<1x128xf32> to vector<4x128xf32>
    %22 = arith.subf %18, %21 : vector<4x128xf32>
    %23 = math.exp %22 : vector<4x128xf32>
    %cst_10 = arith.constant dense<0.000000e+00> : vector<128xf32>
    %24 = vector.multi_reduction <add>, %23, %cst_10 [0] : vector<4x128xf32> to vector<128xf32>
    %25 = vector.shape_cast %24 : vector<128xf32> to vector<1x128xf32>
    %26 = tpu.reciprocal %25 {approx = true} : vector<1x128xf32> -> vector<1x128xf32>
    %27 = vector.broadcast %26 : vector<1x128xf32> to vector<4x128xf32>
    %28 = arith.mulf %23, %27 : vector<4x128xf32>
    %29 = vector.shape_cast %28 : vector<4x128xf32> to vector<4x1x128xf32>
    %30 = vector.broadcast %29 : vector<4x1x128xf32> to vector<4x8x128xf32>
    %31 = arith.mulf %30, %13 : vector<4x8x128xf32>
    %cst_11 = arith.constant dense<0.000000e+00> : vector<8x128xf32>
    %32 = vector.multi_reduction <add>, %31, %cst_11 [0] : vector<4x8x128xf32> to vector<8x128xf32>
    %c0_12 = arith.constant 0 : index
    %33 = memref.load %arg1[%c0_12] : memref<1xf32, #tpu.memory_space<smem>>
    %34 = vector.broadcast %33 : f32 to vector<8x128xf32>
    %35 = arith.mulf %34, %32 : vector<8x128xf32>
    %c0_13 = arith.constant 0 : index
    %c0_14 = arith.constant 0 : index
    %36 = vector.load %arg6[%c0_13, %c0_14] : memref<8x128xf32, #tpu.memory_space<vmem>>, vector<8x128xf32>
    tpu.vector_store %arg6[%c0_13, %c0_14], %35 {strides = array<i32>} : memref<8x128xf32, #tpu.memory_space<vmem>>, vector<8x128xf32>,
    return
  }
  func.func @transform_0(%arg0: i32) -> i32 {
    %c0_i32 = arith.constant 0 : i32
    %c0_i32_0 = arith.constant 0 : i32
    return %c0_i32 : i32
  }
  func.func @transform_1(%arg0: i32) -> (i32, i32) {
    %c0_i32 = arith.constant 0 : i32
    %c0_i32_0 = arith.constant 0 : i32
    return %c0_i32, %arg0 : i32, i32
  }
  func.func @transform_2(%arg0: i32) -> (i32, i32) {
    %c0_i32 = arith.constant 0 : i32
    %c0_i32_0 = arith.constant 0 : i32
    %c0_i32_1 = arith.constant 0 : i32
    return %c0_i32, %c0_i32_0 : i32, i32
  }
  func.func @transform_3(%arg0: i32) -> (i32, i32, i32) {
    %c0_i32 = arith.constant 0 : i32
    %c0_i32_0 = arith.constant 0 : i32
    %c0_i32_1 = arith.constant 0 : i32
    %c0_i32_2 = arith.constant 0 : i32
    return %c0_i32, %c0_i32_0, %c0_i32_1 : i32, i32, i32
  }
  func.func @transform_4(%arg0: i32) -> (i32, i32) {
    %c0_i32 = arith.constant 0 : i32
    %c0_i32_0 = arith.constant 0 : i32
    %c0_i32_1 = arith.constant 0 : i32
    return %c0_i32, %c0_i32_0 : i32, i32
  }
  func.func @transform_5(%arg0: i32) -> (i32, i32) {
    %c0_i32 = arith.constant 0 : i32
    %c0_i32_0 = arith.constant 0 : i32
    return %c0_i32, %arg0 : i32, i32
  }
}

</mosaic_0001>

<bundles_post_ra>
// kernel: tpu_custom_call.1
= control target key start
LH: loop header
LB: loop body
LE: loop exit
PB: predicated region body
PF: predicated region fallthrough
CT: control target
= control target key end

     0   :  { %11 = vsyncpa [#allocation4], 0  ;;  %s987_s0 = inlined_call_operand.<no memory space> [shape: f32[1], index: 0, kind: input, shape index: {}]   ;;  %s988_s1 = inlined_call_operand.vmem [shape: f32[8,128], index: 1, kind: input, shape index: {}]   ;;  %s989_s2 = inlined_call_operand.vmem [shape: f32[4,8], index: 2, kind: input, shape index: {}]   ;;  %s990_s3 = inlined_call_operand.hbm [shape: f32[4,8,8], index: 3, kind: input, shape index: {}]   ;;  %s991_s4 = inlined_call_operand.vmem [shape: f32[4,1], index: 4, kind: input, shape index: {}]   ;;  %s992_s5 = inlined_call_operand.hbm [shape: f32[8,128], index: 5, kind: output, shape index: {}]  }
   0x1   :  { %12 = vsyncpa [#allocation5], 0  ;;  %s786_s18 = smov [#allocation3]   ;;  %s738_s22 = scalar_lea.hbm %s990_s3, 512 }
   0x2   :  { %s24_s19 = sshll.u32 %s786_s18, 4  ;;  %p739_p0 = scmp.ne.s32.totalorder %s990_s3, %s738_s22  ;;  %s25_s19 = int_to_ptr.vmem [resolvable:$true] %s24_s19 }
   0x3   :  { %p742_p1 = scmp.lt.u32.totalorder %s738_s22, %s990_s3 }
   0x5   :  { %p744_p2 = pnand %p742_p1, %p739_p0 }
   0x7   :  { %747 = shalt.err (!%p744_p2)
}
   0x8   :  { %s748_s27 = scalar_lea.vmem %s25_s19, 512  ;;  %p753_p4 = scmp.lt.s32.totalorder %s25_s19, %s25_s19 }
   0x9   :  { %p749_p3 = scmp.ne.s32.totalorder %s25_s19, %s748_s27  ;;  %p754_p5 = scmp.lt.s32.totalorder %s748_s27, %s748_s27 }
   0xb   :  { %p755_p6 = por %p754_p5, %p753_p4 }
   0xd   :  { %p756_p7 = pnand %p755_p6, %p749_p3 }
   0xf   :  { %759 = shalt.err (!%p756_p7)
}
  0x10   :  { %s787_s28 = smov 128   ;;  %s788_s29 = smov 8  }
  0x11   :  { %30 = dma.hbm_to_vmem [thread:$0]  %s990_s3, 512, %s25_s19, [#allocation4], %s787_s28, %s787_s28, %s788_s29  }
  0x12   :  { %782 = dma.done.wait [#allocation4], 512  }
  0x13   :  { %783 = vsyncadd [#allocation4], 4294966784  ;;  %v42_v0 = vlaneseq  ;;  %v789_v1 = vmov 0   ;;  %v37_v7 = vld [vmem:[%s989_s2] sm:$0xf]  ;;  %v39_v15 = vld [vmem:[#allocation3 + $0x8] sm:$0xff] }
  0x14   :  { %733 = vset.pattern.permute.xlu0 %v789_v1  ;;  %v38_v12 = vld [vmem:[#allocation3] sm:$0xff]  ;;  %v40_v20 = vld [vmem:[#allocation3 + $0x10] sm:$0xff]  ;;  %v41_v25 = vld [vmem:[#allocation3 + $0x18] sm:$0xff]  ;;  %vm554_vm0 = vcmask 1041409   ;;  %vm556_vm1 = vcmask 1042434   ;;  %vm558_vm2 = vcmask 1043459  }
  0x15   :  { %v834_v2 = vshrl.u32 %v42_v0, 7  ;;  %v621_v52 = vld [vmem:[%s991_s4] sm:$0xf]  ;;  %vm560_vm3 = vcmask 1044484   ;;  %vm562_vm4 = vcmask 1045509   ;;  %vm564_vm5 = vcmask 1046534  }
  0x16   :  { %v36_v55 = vld [vmem:[%s988_s1] sm:$0xff]  ;;  %vm566_vm6 = vcmask 1047559   ;;  %vm636_vm7 = vcmask 1043456   ;;  %s791_s11 = smov [#allocation6]  }
  0x17   :  { %v58_v3 = vsub.s32 2, %v834_v2  ;;  %v838_v4 = vsub.s32 0, %v834_v2  ;;  %v65_v5 = vsub.s32 3, %v834_v2  ;;  %v51_v6 = vsub.s32 1, %v834_v2  ;;  %s718_s12 = sshll.u32 %s791_s11, 4  ;;  %s719_s12 = int_to_ptr.vmem [resolvable:$true] %s718_s12 }
  0x18   :  { %v104_v28 = vsub.s32 4, %v834_v2  ;;  %v111_v33 = vsub.s32 5, %v834_v2  ;;  %v118_v38 = vsub.s32 6, %v834_v2  ;;  %v125_v43 = vsub.s32 7, %v834_v2  ;;  %s760_s13 = scalar_lea.vmem %s719_s12, 128  ;;  %p765_p9 = scmp.lt.s32.totalorder %s719_s12, %s719_s12 }
  0x19   :  { %v59_v8 = vrot.slane %v37_v7, %v58_v3  ;;  %v45_v9 = vrot.slane %v37_v7, %v838_v4  ;;  %v66_v10 = vrot.slane %v37_v7, %v65_v5  ;;  %v52_v11 = vrot.slane %v37_v7, %v51_v6  ;;  %p761_p8 = scmp.ne.s32.totalorder %s719_s12, %s760_s13  ;;  %p766_p10 = scmp.lt.s32.totalorder %s760_s13, %s760_s13 }
  0x1a   :  { %v84_v13 = vrot.slane %v38_v12, %v51_v6  ;;  %v77_v14 = vrot.slane %v38_v12, %v838_v4  ;;  %v140_v16 = vrot.slane %v39_v15, %v51_v6  ;;  %v133_v17 = vrot.slane %v39_v15, %v838_v4 }
  0x1b   :  { %61 = vbcast.lane.b32.xlu1 %v59_v8, 256  ;;  %47 = vbcast.lane.b32.xlu0 %v45_v9, 256  ;;  %v147_v18 = vrot.slane %v39_v15, %v58_v3  ;;  %v91_v19 = vrot.slane %v38_v12, %v58_v3  ;;  %v196_v21 = vrot.slane %v40_v20, %v51_v6  ;;  %p767_p11 = por %p766_p10, %p765_p9 }
  0x1c   :  { %v189_v22 = vrot.slane %v40_v20, %v838_v4  ;;  %v154_v23 = vrot.slane %v39_v15, %v65_v5  ;;  %v98_v24 = vrot.slane %v38_v12, %v65_v5  ;;  %v245_v26 = vrot.slane %v41_v25, %v838_v4 }
  0x1d   :  { %v203_v27 = vrot.slane %v40_v20, %v58_v3  ;;  %v105_v29 = vrot.slane %v38_v12, %v104_v28  ;;  %v252_v30 = vrot.slane %v41_v25, %v51_v6  ;;  %v210_v31 = vrot.slane %v40_v20, %v65_v5  ;;  %p768_p12 = pnand %p767_p11, %p761_p8 }
  0x1e   :  { %v161_v32 = vrot.slane %v39_v15, %v104_v28  ;;  %v112_v34 = vrot.slane %v38_v12, %v111_v33  ;;  %v259_v35 = vrot.slane %v41_v25, %v58_v3  ;;  %v217_v36 = vrot.slane %v40_v20, %v104_v28 }
  0x1f   :  { %68 = vbcast.lane.b32.xlu1 %v66_v10, 256  ;;  %54 = vbcast.lane.b32.xlu0 %v52_v11, 256  ;;  %v168_v37 = vrot.slane %v39_v15, %v111_v33  ;;  %v119_v39 = vrot.slane %v38_v12, %v118_v38  ;;  %v266_v40 = vrot.slane %v41_v25, %v65_v5 }
  0x20   :  { %v224_v41 = vrot.slane %v40_v20, %v111_v33  ;;  %v175_v42 = vrot.slane %v39_v15, %v118_v38  ;;  %v126_v44 = vrot.slane %v38_v12, %v125_v43  ;;  %v273_v45 = vrot.slane %v41_v25, %v104_v28 }
  0x21   :  { %v231_v46 = vrot.slane %v40_v20, %v118_v38  ;;  %v182_v47 = vrot.slane %v39_v15, %v125_v43  ;;  %v238_v48 = vrot.slane %v40_v20, %v125_v43  ;;  %v280_v49 = vrot.slane %v41_v25, %v111_v33 }
  0x22   :  { %v294_v50 = vrot.slane %v41_v25, %v125_v43  ;;  %v287_v51 = vrot.slane %v41_v25, %v118_v38 }
  0x23   :  { %86 = vbcast.lane.b32.xlu1 %v84_v13, 256  ;;  %79 = vbcast.lane.b32.xlu0 %v77_v14, 256 }
  0x27   :  { %142 = vbcast.lane.b32.xlu1 %v140_v16, 256  ;;  %135 = vbcast.lane.b32.xlu0 %v133_v17, 256 }
  0x2b   :  { %149 = vbcast.lane.b32.xlu1 %v147_v18, 256  ;;  %93 = vbcast.lane.b32.xlu0 %v91_v19, 256 }
  0x2f   :  { %198 = vbcast.lane.b32.xlu1 %v196_v21, 256  ;;  %191 = vbcast.lane.b32.xlu0 %v189_v22, 256 }
  0x33   :  { %156 = vbcast.lane.b32.xlu1 %v154_v23, 256  ;;  %100 = vbcast.lane.b32.xlu0 %v98_v24, 256 }
  0x37   :  { %247 = vbcast.lane.b32.xlu1 %v245_v26, 256  ;;  %205 = vbcast.lane.b32.xlu0 %v203_v27, 256 }
  0x3b   :  { %107 = vbcast.lane.b32.xlu1 %v105_v29, 256  ;;  %254 = vbcast.lane.b32.xlu0 %v252_v30, 256 }
  0x3f   :  { %212 = vbcast.lane.b32.xlu1 %v210_v31, 256  ;;  %163 = vbcast.lane.b32.xlu0 %v161_v32, 256 }
  0x43   :  { %114 = vbcast.lane.b32.xlu1 %v112_v34, 256  ;;  %261 = vbcast.lane.b32.xlu0 %v259_v35, 256 }
  0x47   :  { %219 = vbcast.lane.b32.xlu1 %v217_v36, 256  ;;  %170 = vbcast.lane.b32.xlu0 %v168_v37, 256 }
  0x4b   :  { %121 = vbcast.lane.b32.xlu1 %v119_v39, 256  ;;  %268 = vbcast.lane.b32.xlu0 %v266_v40, 256 }
  0x4f   :  { %226 = vbcast.lane.b32.xlu1 %v224_v41, 256  ;;  %177 = vbcast.lane.b32.xlu0 %v175_v42, 256 }
  0x53   :  { %128 = vbcast.lane.b32.xlu1 %v126_v44, 256  ;;  %275 = vbcast.lane.b32.xlu0 %v273_v45, 256 }
  0x57   :  { %233 = vbcast.lane.b32.xlu1 %v231_v46, 256  ;;  %184 = vbcast.lane.b32.xlu0 %v182_v47, 256 }
  0x5b   :  { %240 = vbcast.lane.b32.xlu1 %v238_v48, 256  ;;  %282 = vbcast.lane.b32.xlu0 %v280_v49, 256 }
  0x5f   :  { %296 = vbcast.lane.b32.xlu1 %v294_v50, 256  ;;  %289 = vbcast.lane.b32.xlu0 %v287_v51, 256 }
  0x63   :  { %624 = vperm.xlu0 %733, %v621_v52  }
  0x8d   :  { %v62_v53 = vpop.permute.xlu1 %61  ;;  %v48_v54 = vpop.permute.xlu0 %47 }
  0x8e   :  { %v860_v58 = vsub.f32 %v36_v55, %v48_v54  ;;  %v870_v22 = vsub.f32 %v36_v55, %v62_v53 }
  0x91   :  { %v69_v56 = vpop.permute.xlu1 %68  ;;  %v55_v57 = vpop.permute.xlu0 %54 }
  0x92   :  { %v864_v63 = vsub.f32 %v36_v55, %v55_v57  ;;  %v874_v41 = vsub.f32 %v36_v55, %v69_v56 }
  0x95   :  { %v87_v59 = vpop.permute.xlu1 %86  ;;  %v80_v60 = vpop.permute.xlu0 %79 }
  0x96   :  { %v299_v61 = vmul.f32 %v87_v59, %v860_v58  ;;  %v298_v62 = vmul.f32 %v80_v60, %v860_v58 }
  0x98   :  { %v336_v0 = vrot.slane %v299_v61, 4  ;;  %v330_v1 = vrot.slane %v298_v62, 4 }
  0x99   :  { %v143_v3 = vpop.permute.xlu1 %142  ;;  %v136_v5 = vpop.permute.xlu0 %135 }
  0x9a   :  { %v337_v6 = vadd.f32 %v336_v0, %v299_v61  ;;  %v331_v7 = vadd.f32 %v330_v1, %v298_v62  ;;  %v307_v8 = vmul.f32 %v143_v3, %v864_v63  ;;  %v306_v9 = vmul.f32 %v136_v5, %v864_v63 }
  0x9c   :  { %v384_v10 = vrot.slane %v307_v8, 4  ;;  %v378_v11 = vrot.slane %v306_v9, 4  ;;  %v338_v14 = vrot.slane %v337_v6, 2  ;;  %v332_v15 = vrot.slane %v331_v7, 2 }
  0x9d   :  { %v150_v12 = vpop.permute.xlu1 %149  ;;  %v94_v13 = vpop.permute.xlu0 %93 }
  0x9e   :  { %v385_v16 = vadd.f32 %v384_v10, %v307_v8  ;;  %v379_v17 = vadd.f32 %v378_v11, %v306_v9  ;;  %v308_v18 = vmul.f32 %v150_v12, %v864_v63  ;;  %v300_v19 = vmul.f32 %v94_v13, %v860_v58 }
  0x9f   :  { %v339_v27 = vadd.f32 %v338_v14, %v337_v6  ;;  %v333_v28 = vadd.f32 %v332_v15, %v331_v7 }
  0xa0   :  { %v386_v20 = vrot.slane %v385_v16, 2  ;;  %v380_v21 = vrot.slane %v379_v17, 2  ;;  %v390_v23 = vrot.slane %v308_v18, 4  ;;  %v342_v24 = vrot.slane %v300_v19, 4 }
  0xa1   :  { %v199_v25 = vpop.permute.xlu1 %198  ;;  %v192_v26 = vpop.permute.xlu0 %191  ;;  %v340_v42 = vrot.slane %v339_v27, 1  ;;  %v334_v45 = vrot.slane %v333_v28, 1 }
  0xa2   :  { %v391_v29 = vadd.f32 %v390_v23, %v308_v18  ;;  %v343_v30 = vadd.f32 %v342_v24, %v300_v19  ;;  %v315_v31 = vmul.f32 %v199_v25, %v870_v22  ;;  %v314_v32 = vmul.f32 %v192_v26, %v870_v22 }
  0xa3   :  { %v387_v33 = vadd.f32 %v386_v20, %v385_v16  ;;  %v381_v34 = vadd.f32 %v380_v21, %v379_v17  ;;  %v341_v1 = vadd.f32 %v340_v42, %v339_v27  ;;  %v335_v8 = vadd.f32 %v334_v45, %v333_v28 }
  0xa4   :  { %v392_v35 = vrot.slane %v391_v29, 2  ;;  %v344_v36 = vrot.slane %v343_v30, 2  ;;  %v432_v37 = vrot.slane %v315_v31, 4  ;;  %v426_v38 = vrot.slane %v314_v32, 4 }
  0xa5   :  { %v157_v39 = vpop.permute.xlu1 %156  ;;  %v101_v40 = vpop.permute.xlu0 %100  ;;  %v388_v49 = vrot.slane %v387_v33, 1  ;;  %v382_v53 = vrot.slane %v381_v34, 1  ;;  %v555_v25 = vsel %vm554_vm0, %v341_v1, %v335_v8 }
  0xa6   :  { %v309_v43 = vmul.f32 %v157_v39, %v864_v63  ;;  %v301_v44 = vmul.f32 %v101_v40, %v860_v58  ;;  %v345_v46 = vadd.f32 %v344_v36, %v343_v30  ;;  %v433_v47 = vadd.f32 %v432_v37, %v315_v31 }
  0xa7   :  { %v427_v48 = vadd.f32 %v426_v38, %v314_v32  ;;  %v393_v50 = vadd.f32 %v392_v35, %v391_v29  ;;  %v389_v9 = vadd.f32 %v388_v49, %v387_v33  ;;  %v383_v10 = vadd.f32 %v382_v53, %v381_v34 }
  0xa8   :  { %v396_v51 = vrot.slane %v309_v43, 4  ;;  %v348_v52 = vrot.slane %v301_v44, 4  ;;  %v346_v54 = vrot.slane %v345_v46, 1  ;;  %v434_v57 = vrot.slane %v433_v47, 2 }
  0xa9   :  { %v428_v59 = vrot.slane %v427_v48, 2  ;;  %v248_v60 = vpop.permute.xlu1 %247  ;;  %v206_v55 = vpop.permute.xlu0 %205  ;;  %v394_v3 = vrot.slane %v393_v50, 1  ;;  %v568_v26 = vsel %vm554_vm0, %v389_v9, %v383_v10 }
  0xaa   :  { %v397_v56 = vadd.f32 %v396_v51, %v309_v43  ;;  %v349_v61 = vadd.f32 %v348_v52, %v301_v44  ;;  %v322_v62 = vmul.f32 %v248_v60, %v874_v41  ;;  %v316_v0 = vmul.f32 %v206_v55, %v870_v22 }
  0xab   :  { %v347_v11 = vadd.f32 %v346_v54, %v345_v46  ;;  %v435_v14 = vadd.f32 %v434_v57, %v433_v47  ;;  %v429_v15 = vadd.f32 %v428_v59, %v427_v48  ;;  %v395_v20 = vadd.f32 %v394_v3, %v393_v50 }
  0xac   :  { %v350_v5 = vrot.slane %v349_v61, 2  ;;  %v474_v6 = vrot.slane %v322_v62, 4  ;;  %v438_v7 = vrot.slane %v316_v0, 4  ;;  %v398_v16 = vrot.slane %v397_v56, 2 }
  0xad   :  { %v108_v12 = vpop.permute.xlu1 %107  ;;  %v255_v13 = vpop.permute.xlu0 %254  ;;  %v436_v31 = vrot.slane %v435_v14, 1  ;;  %v430_v32 = vrot.slane %v429_v15, 1  ;;  %v557_v34 = vsel %vm556_vm1, %v347_v11, %v555_v25  ;;  %v569_v43 = vsel %vm556_vm1, %v395_v20, %v568_v26 }
  0xae   :  { %v439_v17 = vadd.f32 %v438_v7, %v316_v0  ;;  %v302_v18 = vmul.f32 %v108_v12, %v860_v58  ;;  %v323_v19 = vmul.f32 %v255_v13, %v874_v41  ;;  %v351_v21 = vadd.f32 %v350_v5, %v349_v61 }
  0xaf   :  { %v475_v23 = vadd.f32 %v474_v6, %v322_v62  ;;  %v399_v33 = vadd.f32 %v398_v16, %v397_v56  ;;  %v437_v50 = vadd.f32 %v436_v31, %v435_v14  ;;  %v431_v51 = vadd.f32 %v430_v32, %v429_v15 }
  0xb0   :  { %v440_v24 = vrot.slane %v439_v17, 2  ;;  %v354_v27 = vrot.slane %v302_v18, 4  ;;  %v480_v28 = vrot.slane %v323_v19, 4  ;;  %v352_v39 = vrot.slane %v351_v21, 1 }
  0xb1   :  { %v213_v29 = vpop.permute.xlu1 %212  ;;  %v164_v30 = vpop.permute.xlu0 %163  ;;  %v476_v40 = vrot.slane %v475_v23, 2  ;;  %v400_v54 = vrot.slane %v399_v33, 1  ;;  %v575_v20 = vsel %vm554_vm0, %v437_v50, %v431_v51 }
  0xb2   :  { %v355_v35 = vadd.f32 %v354_v27, %v302_v18  ;;  %v481_v36 = vadd.f32 %v480_v28, %v323_v19  ;;  %v317_v37 = vmul.f32 %v213_v29, %v870_v22  ;;  %v310_v38 = vmul.f32 %v164_v30, %v864_v63 }
  0xb3   :  { %v441_v42 = vadd.f32 %v440_v24, %v439_v17  ;;  %v353_v55 = vadd.f32 %v352_v39, %v351_v21  ;;  %v477_v56 = vadd.f32 %v476_v40, %v475_v23  ;;  %v401_v12 = vadd.f32 %v400_v54, %v399_v33 }
  0xb4   :  { %v356_v44 = vrot.slane %v355_v35, 2  ;;  %v482_v45 = vrot.slane %v481_v36, 2  ;;  %v444_v46 = vrot.slane %v317_v37, 4  ;;  %v402_v47 = vrot.slane %v310_v38, 4 }
  0xb5   :  { %v115_v48 = vpop.permute.xlu1 %114  ;;  %v262_v49 = vpop.permute.xlu0 %261  ;;  %v442_v0 = vrot.slane %v441_v42, 1  ;;  %v478_v21 = vrot.slane %v477_v56, 1  ;;  %v559_v26 = vsel %vm558_vm2, %v353_v55, %v557_v34 }
  0xb6   :  { %v303_v52 = vmul.f32 %v115_v48, %v860_v58  ;;  %v324_v53 = vmul.f32 %v262_v49, %v874_v41  ;;  %v357_v57 = vadd.f32 %v356_v44, %v355_v35  ;;  %v445_v59 = vadd.f32 %v444_v46, %v317_v37 }
  0xb7   :  { %v403_v60 = vadd.f32 %v402_v47, %v310_v38  ;;  %v483_v1 = vadd.f32 %v482_v45, %v481_v36  ;;  %v443_v23 = vadd.f32 %v442_v0, %v441_v42  ;;  %v570_v35 = vsel %vm558_vm2, %v401_v12, %v569_v43 }
  0xb8   :  { %v360_v61 = vrot.slane %v303_v52, 4  ;;  %v486_v62 = vrot.slane %v324_v53, 4  ;;  %v446_v3 = vrot.slane %v445_v59, 2  ;;  %v358_v13 = vrot.slane %v357_v57, 1 }
  0xb9   :  { %v404_v5 = vrot.slane %v403_v60, 2  ;;  %v220_v6 = vpop.permute.xlu1 %219  ;;  %v171_v7 = vpop.permute.xlu0 %170  ;;  %v484_v27 = vrot.slane %v483_v1, 1  ;;  %v897_v40 = vadd.f32 %v478_v21, %v477_v56  ;;  %v576_v50 = vsel %vm556_vm1, %v443_v23, %v575_v20 }
  0xba   :  { %v361_v8 = vadd.f32 %v360_v61, %v303_v52  ;;  %v487_v9 = vadd.f32 %v486_v62, %v324_v53  ;;  %v318_v10 = vmul.f32 %v220_v6, %v870_v22  ;;  %v311_v11 = vmul.f32 %v171_v7, %v864_v63 }
  0xbb   :  { %v447_v14 = vadd.f32 %v446_v3, %v445_v59  ;;  %v405_v15 = vadd.f32 %v404_v5, %v403_v60  ;;  %v359_v31 = vadd.f32 %v358_v13, %v357_v57  ;;  %v899_v47 = vadd.f32 %v484_v27, %v483_v1 }
  0xbc   :  { %v362_v16 = vrot.slane %v361_v8, 2  ;;  %v488_v17 = vrot.slane %v487_v9, 2  ;;  %v450_v18 = vrot.slane %v318_v10, 4  ;;  %v408_v19 = vrot.slane %v311_v11, 4 }
  0xbd   :  { %v122_v24 = vpop.permute.xlu1 %121  ;;  %v269_v25 = vpop.permute.xlu0 %268  ;;  %v406_v28 = vrot.slane %v405_v15, 1  ;;  %v448_v36 = vrot.slane %v447_v14, 1  ;;  %v561_v60 = vsel %vm560_vm3, %v359_v31, %v559_v26 }
  0xbe   :  { %v451_v29 = vadd.f32 %v450_v18, %v318_v10  ;;  %v409_v30 = vadd.f32 %v408_v19, %v311_v11  ;;  %v304_v32 = vmul.f32 %v122_v24, %v860_v58  ;;  %v325_v33 = vmul.f32 %v269_v25, %v874_v41 }
  0xbf   :  { %v363_v37 = vadd.f32 %v362_v16, %v361_v8  ;;  %v489_v38 = vadd.f32 %v488_v17, %v487_v9  ;;  %v407_v48 = vadd.f32 %v406_v28, %v405_v15  ;;  %v449_v54 = vadd.f32 %v448_v36, %v447_v14 }
  0xc0   :  { %v410_v39 = vrot.slane %v409_v30, 2  ;;  %v452_v42 = vrot.slane %v451_v29, 2  ;;  %v366_v44 = vrot.slane %v304_v32, 4  ;;  %v492_v34 = vrot.slane %v325_v33, 4 }
  0xc1   :  { %v227_v45 = vpop.permute.xlu1 %226  ;;  %v178_v46 = vpop.permute.xlu0 %177  ;;  %v364_v57 = vrot.slane %v363_v37, 1  ;;  %v490_v59 = vrot.slane %v489_v38, 1  ;;  %v571_v7 = vsel %vm560_vm3, %v407_v48, %v570_v35  ;;  %v909_v15 = vsel %vm558_vm2, %v449_v54, %v576_v50 }
  0xc2   :  { %v411_v49 = vadd.f32 %v410_v39, %v409_v30  ;;  %v367_v51 = vadd.f32 %v366_v44, %v304_v32  ;;  %v493_v43 = vadd.f32 %v492_v34, %v325_v33  ;;  %v319_v52 = vmul.f32 %v227_v45, %v870_v22 }
  0xc3   :  { %v312_v53 = vmul.f32 %v178_v46, %v864_v63  ;;  %v453_v55 = vadd.f32 %v452_v42, %v451_v29  ;;  %v365_v12 = vadd.f32 %v364_v57, %v363_v37  ;;  %v913_v27 = vadd.f32 %v490_v59, %v489_v38 }
  0xc4   :  { %v368_v56 = vrot.slane %v367_v51, 2  ;;  %v456_v61 = vrot.slane %v319_v52, 4  ;;  %v412_v3 = vrot.slane %v411_v49, 1  ;;  %v494_v9 = vrot.slane %v493_v43, 2 }
  0xc5   :  { %v414_v62 = vrot.slane %v312_v53, 4  ;;  %v129_v0 = vpop.permute.xlu1 %128  ;;  %v276_v1 = vpop.permute.xlu0 %275  ;;  %v454_v16 = vrot.slane %v453_v55, 1  ;;  %v563_v34 = vsel %vm562_vm4, %v365_v12, %v561_v60 }
  0xc6   :  { %v305_v5 = vmul.f32 %v129_v0, %v860_v58  ;;  %v326_v6 = vmul.f32 %v276_v1, %v874_v41  ;;  %v369_v8 = vadd.f32 %v368_v56, %v367_v51  ;;  %v457_v10 = vadd.f32 %v456_v61, %v319_v52 }
  0xc7   :  { %v415_v11 = vadd.f32 %v414_v62, %v312_v53  ;;  %v413_v28 = vadd.f32 %v412_v3, %v411_v49  ;;  %v915_v29 = vadd.f32 %v494_v9, %v493_v43  ;;  %v455_v36 = vadd.f32 %v454_v16, %v453_v55 }
  0xc8   :  { %v372_v13 = vrot.slane %v305_v5, 4  ;;  %v498_v14 = vrot.slane %v326_v6, 4  ;;  %v370_v17 = vrot.slane %v369_v8, 1  ;;  %v458_v18 = vrot.slane %v457_v10, 2 }
  0xc9   :  { %v416_v19 = vrot.slane %v415_v11, 2  ;;  %v234_v20 = vpop.permute.xlu1 %233  ;;  %v185_v21 = vpop.permute.xlu0 %184  ;;  %v496_v49 = vrot.slane %v915_v29, 1  ;;  %v572_v43 = vsel %vm562_vm4, %v413_v28, %v571_v7 }
  0xca   :  { %v373_v23 = vadd.f32 %v372_v13, %v305_v5  ;;  %v499_v24 = vadd.f32 %v498_v14, %v326_v6  ;;  %v320_v25 = vmul.f32 %v234_v20, %v870_v22  ;;  %v313_v26 = vmul.f32 %v185_v21, %v864_v63 }
  0xcb   :  { %v417_v30 = vadd.f32 %v416_v19, %v415_v11  ;;  %v459_v31 = vadd.f32 %v458_v18, %v457_v10  ;;  %v371_v37 = vadd.f32 %v370_v17, %v369_v8 }
  0xcc   :  { %v374_v32 = vrot.slane %v373_v23, 2  ;;  %v462_v33 = vrot.slane %v320_v25, 4  ;;  %v420_v35 = vrot.slane %v313_v26, 4  ;;  %v500_v39 = vrot.slane %v499_v24, 2 }
  0xcd   :  { %v241_v42 = vpop.permute.xlu1 %240  ;;  %v283_v44 = vpop.permute.xlu0 %282  ;;  %v418_v45 = vrot.slane %v417_v30, 1  ;;  %v460_v52 = vrot.slane %v459_v31, 1  ;;  %v565_v62 = vsel %vm564_vm5, %v371_v37, %v563_v34 }
  0xce   :  { %v375_v46 = vadd.f32 %v374_v32, %v373_v23  ;;  %v463_v48 = vadd.f32 %v462_v33, %v320_v25  ;;  %v421_v38 = vadd.f32 %v420_v35, %v313_v26  ;;  %v321_v50 = vmul.f32 %v241_v42, %v870_v22 }
  0xcf   :  { %v327_v51 = vmul.f32 %v283_v44, %v874_v41  ;;  %v501_v59 = vadd.f32 %v500_v39, %v499_v24  ;;  %v419_v0 = vadd.f32 %v418_v45, %v417_v30  ;;  %v461_v10 = vadd.f32 %v460_v52, %v459_v31 }
  0xd0   :  { %v376_v53 = vrot.slane %v375_v46, 1  ;;  %v464_v54 = vrot.slane %v463_v48, 2  ;;  %v422_v57 = vrot.slane %v421_v38, 2  ;;  %v468_v55 = vrot.slane %v321_v50, 4 }
  0xd1   :  { %v504_v56 = vrot.slane %v327_v51, 4  ;;  %v297_v60 = vpop.permute.xlu1 %296  ;;  %v290_v61 = vpop.permute.xlu0 %289  ;;  %v502_v19 = vrot.slane %v501_v59, 1  ;;  %v573_v21 = vsel %vm564_vm5, %v419_v0, %v572_v43  ;;  %v578_v32 = vsel %vm560_vm3, %v455_v36, %v909_v15 }
  0xd2   :  { %v377_v1 = vadd.f32 %v376_v53, %v375_v46  ;;  %v465_v3 = vadd.f32 %v464_v54, %v463_v48  ;;  %v423_v5 = vadd.f32 %v422_v57, %v421_v38  ;;  %v469_v6 = vadd.f32 %v468_v55, %v321_v50 }
  0xd3   :  { %v505_v8 = vadd.f32 %v504_v56, %v327_v51  ;;  %v329_v9 = vmul.f32 %v297_v60, %v874_v41  ;;  %v328_v7 = vmul.f32 %v290_v61, %v874_v41  ;;  %v497_v44 = vadd.f32 %v496_v49, %v915_v29 }
  0xd4   :  { %v466_v11 = vrot.slane %v465_v3, 1  ;;  %v424_v12 = vrot.slane %v423_v5, 1  ;;  %v926_v13 = vsel %vm566_vm6, %v377_v1, %v565_v62  ;;  %v470_v14 = vrot.slane %v469_v6, 2 }
  0xd5   :  { %v506_v16 = vrot.slane %v505_v8, 2  ;;  %v516_v17 = vrot.slane %v329_v9, 4  ;;  %v510_v18 = vrot.slane %v328_v7, 4  ;;  %v593_v23 = vmul.f32 %v926_v13, %v860_v58 }
  0xd6   :  { %v425_v20 = vadd.f32 %v424_v12, %v423_v5  ;;  %v471_v24 = vadd.f32 %v470_v14, %v469_v6  ;;  %v467_v30 = vadd.f32 %v466_v11, %v465_v3  ;;  %v582_v58 = vsel %vm554_vm0, %v899_v47, %v897_v40 }
  0xd7   :  { %v507_v25 = vadd.f32 %v506_v16, %v505_v8  ;;  %v517_v26 = vadd.f32 %v516_v17, %v329_v9  ;;  %v511_v28 = vadd.f32 %v510_v18, %v328_v7  ;;  %v597_v33 = vrot.slane %v593_v23, 4 }
  0xd8   :  { %v932_v31 = vsel %vm566_vm6, %v425_v20, %v573_v21  ;;  %v472_v35 = vrot.slane %v471_v24, 1  ;;  %v579_v34 = vsel %vm562_vm4, %v461_v10, %v578_v32  ;;  %v503_v46 = vadd.f32 %v502_v19, %v501_v59 }
  0xd9   :  { %v508_v37 = vrot.slane %v507_v25, 1  ;;  %v518_v39 = vrot.slane %v517_v26, 2  ;;  %v512_v42 = vrot.slane %v511_v28, 2  ;;  %v594_v45 = vmul.f32 %v932_v31, %v864_v63 }
  0xda   :  { %v473_v48 = vadd.f32 %v472_v35, %v471_v24  ;;  %v580_v50 = vsel %vm564_vm5, %v467_v30, %v579_v34  ;;  %v583_v51 = vsel %vm556_vm1, %v913_v27, %v582_v58  ;;  %v598_v29 = vadd.f32 %v597_v33, %v593_v23 }
  0xdb   :  { %v519_v38 = vadd.f32 %v518_v39, %v517_v26  ;;  %v513_v15 = vadd.f32 %v512_v42, %v511_v28  ;;  %v509_v36 = vadd.f32 %v508_v37, %v507_v25  ;;  %v603_v43 = vrot.slane %v594_v45, 4 }
  0xdc   :  { %v947_v47 = vsel %vm566_vm6, %v473_v48, %v580_v50  ;;  %v584_v49 = vsel %vm558_vm2, %v497_v44, %v583_v51  ;;  %v599_v61 = vrot.slane %v598_v29, 2 }
  0xdd   :  { %v520_v52 = vrot.slane %v519_v38, 1  ;;  %v514_v40 = vrot.slane %v513_v15, 1  ;;  %v595_v63 = vmul.f32 %v947_v47, %v870_v22  ;;  %v604_v53 = vadd.f32 %v603_v43, %v594_v45 }
  0xde   :  { %v585_v59 = vsel %vm560_vm3, %v503_v46, %v584_v49  ;;  %v600_v5 = vadd.f32 %v599_v61, %v598_v29 }
  0xdf   :  { %v521_v54 = vadd.f32 %v520_v52, %v519_v38  ;;  %v515_v57 = vadd.f32 %v514_v40, %v513_v15  ;;  %v586_v55 = vsel %vm562_vm4, %v509_v36, %v585_v59  ;;  %v605_v27 = vrot.slane %v604_v53, 2 }
  0xe0   :  { %v609_v56 = vrot.slane %v595_v63, 4  ;;  %v601_v11 = vrot.slane %v600_v5, 1  ;;  %v790_v36 = vmov 1966171168  }
  0xe1   :  { %v587_v60 = vsel %vm564_vm5, %v515_v57, %v586_v55  ;;  %v606_v22 = vadd.f32 %v605_v27, %v604_v53  ;;  %v658_v50 = vunpack.c.l.s4 %v790_v36 }
  0xe2   :  { %v956_v62 = vsel %vm566_vm6, %v521_v54, %v587_v60  ;;  %v610_v0 = vadd.f32 %v609_v56, %v595_v63  ;;  %v602_v18 = vadd.f32 %v601_v11, %v600_v5  ;;  %v625_v20 = vpop.permute.xlu0 %624 }
  0xe3   :  { %v596_v1 = vmul.f32 %v956_v62, %v874_v41  ;;  %v607_v9 = vrot.slane %v606_v22, 1  ;;  %v659_v51 = vunpack.c.0.s8 %v658_v50 }
  0xe4   :  { %v611_v3 = vrot.slane %v610_v0, 2 }
  0xe5   :  { %v615_v6 = vrot.slane %v596_v1, 4  ;;  %v608_v14 = vadd.f32 %v607_v9, %v606_v22  ;;  %v662_v43 = vsub.s32 %v659_v51, %v834_v2 }
  0xe6   :  { %v612_v8 = vadd.f32 %v611_v3, %v610_v0  ;;  %v709_v3 = vstv %s987_s0 }
  0xe7   :  { %v616_v7 = vadd.f32 %v615_v6, %v596_v1  ;;  %v631_v23 = vsel %vm554_vm0, %v608_v14, %v602_v18 }
  0xe8   :  { %v613_v10 = vrot.slane %v612_v8, 1 }
  0xe9   :  { %v617_v12 = vrot.slane %v616_v7, 2 }
  0xea   :  { %v614_v17 = vadd.f32 %v613_v10, %v612_v8 }
  0xeb   :  { %v618_v16 = vadd.f32 %v617_v12, %v616_v7 }
  0xec   :  { %v632_v41 = vsel %vm556_vm1, %v614_v17, %v631_v23 }
  0xed   :  { %v619_v19 = vrot.slane %v618_v16, 1 }
  0xef   :  { %v620_v21 = vadd.f32 %v619_v19, %v618_v16 }
  0xf1   :  { %v633_v24 = vsel %vm558_vm2, %v620_v21, %v632_v41 }
  0xf2   :  { %v635_v25 = vsub.f32 %v625_v20, %v633_v24 }
  0xf4   :  { %v637_v26 = vsel %vm636_vm7, %v635_v25, -inf }
  0xf5   :  { %v638_v28 = vrot.slane %v637_v26, 4 }
  0xf7   :  { %v639_v30 = vmax.f32 %v637_v26, %v638_v28 }
  0xf9   :  { %v640_v32 = vrot.slane %v639_v30, 2 }
  0xfb   :  { %v641_v33 = vmax.f32 %v639_v30, %v640_v32 }
  0xfd   :  { %v642_v35 = vrot.slane %v641_v33, 1 }
  0xff   :  { %v643_v37 = vmax.f32 %v641_v33, %v642_v35 }
 0x101   :  { %v644_v39 = vsub.f32 %v635_v25, %v643_v37 }
 0x103   :  { %v645_v42 = vmul.f32 1.442695, %v644_v39 }
 0x105   :  { %734 = vpow2.f32 %v645_v42 }
 0x10f   :  { %v735_v58 = vpop.eup %734 }
 0x110   :  { %v647_v44 = vsel %vm636_vm7, %v735_v58, 0.0 }
 0x111   :  { %v648_v34 = vrot.slane %v647_v44, 4 }
 0x113   :  { %v649_v45 = vadd.f32 %v648_v34, %v647_v44 }
 0x115   :  { %v650_v46 = vrot.slane %v649_v45, 2 }
 0x117   :  { %v651_v48 = vadd.f32 %v650_v46, %v649_v45 }
 0x119   :  { %v652_v38 = vrot.slane %v651_v48, 1 }
 0x11b   :  { %v653_v15 = vadd.f32 %v652_v38, %v651_v48 }
 0x11d   :  { %736 = vrcp.f32 %v653_v15 }
 0x127   :  { %v737_v52 = vpop.eup %736 }
 0x128   :  { %v655_v40 = vmul.f32 %v737_v52, %v735_v58 }
 0x12a   :  { %v663_v29 = vrot.slane %v655_v40, %v662_v43 }
 0x12c   :  { %v664_v49 = vcombine.high %v663_v29, %v663_v29  ;;  %v671_v63 = vrot.slane %v663_v29, %v662_v43 }
 0x12e   :  { %v678_v53 = vrot.slane %v664_v49, %v662_v43  ;;  %v679_v54 = vcombine.high %v671_v63, %v671_v63  ;;  %v684_v57 = vrot.slane %v671_v63, %v838_v4 }
 0x130   :  { %v680_v59 = vcombine.high %v678_v53, %v678_v53  ;;  %v688_v55 = vrot.slane %v678_v53, %v838_v4  ;;  %v692_v27 = vrot.slane %v679_v54, %v838_v4  ;;  %v701_v60 = vmul.f32 %v684_v57, %v926_v13 }
 0x132   :  { %v696_v56 = vrot.slane %v680_v59, %v838_v4  ;;  %v702_v2 = vmul.f32 %v688_v55, %v932_v31  ;;  %v703_v61 = vmul.f32 %v692_v27, %v947_v47 }
 0x134   :  { %v705_v0 = vadd.f32 %v702_v2, %v701_v60  ;;  %v704_v1 = vmul.f32 %v696_v56, %v956_v62 }
 0x136   :  { %v706_v22 = vadd.f32 %v705_v0, %v703_v61 }
 0x138   :  { %v707_v5 = vadd.f32 %v706_v22, %v704_v1 }
 0x13a   :  { %v710_v6 = vmul.f32 %v709_v3, %v707_v5 }
 0x13c   :  { %711 = vst [vmem:[#allocation6] sm:$0xff] %v710_v6 }
 0x13d   :  { %771 = shalt.err (!%p768_p12)
}
 0x13e   :  { %s772_s16 = scalar_lea.hbm %s992_s5, 128 }
 0x13f   :  { %p773_p13 = scmp.ne.s32.totalorder %s992_s5, %s772_s16  ;;  %p776_p0 = scmp.lt.u32.totalorder %s772_s16, %s992_s5 }
 0x141   :  { %p778_p1 = pnand %p776_p0, %p773_p13 }
 0x143   :  { %781 = shalt.err (!%p778_p1)
}
 0x144   :  { %721 = dma.vmem_to_hbm [thread:$0]  %s719_s12, 128, %s992_s5, [#allocation5]  }
 0x145   :  { %784 = dma.done.wait [#allocation5], 128  }
 0x146   :  { %785 = vsyncadd [#allocation5], 4294967168 }
 0x147   :  { %725 = vsyncpa [#allocation4], 1 }
 0x148   :  { %726 = vsyncpa [#allocation5], 1 }

</bundles_post_ra>
